<compile_context>
chip_gen: v6e
topology: v6e:2x2x1
jax: 0.10.0
libtpu: 0.0.40
codegen_flags: <defaults>
</compile_context>

<pallas_src>
import math
from functools import partial

import jax
import jax.numpy as jnp
from jax import lax
from jax.experimental import pallas as pl
from jax.experimental.pallas import tpu as pltpu


def _attn_kernel(q_ref, k_ref, v_ref, mask_ref, kpm_ref, out_ref, attn_ref,
                 *, scale):
    # q_ref: (TQ, D), k_ref/v_ref: (Sk, D), mask_ref: (TQ, Sk) additive f32,
    # kpm_ref: (1, Sk) additive f32, out_ref: (TQ, D), attn_ref: (TQ, Sk)
    q = q_ref[...]
    k = k_ref[...]
    v = v_ref[...]

    # scores = Q K^T  -> MXU, f32 accumulation, no K transpose materialized.
    scores = lax.dot_general(
        q, k, (((1,), (1,)), ((), ())),
        preferred_element_type=jnp.float32)            # (TQ, Sk) f32

    # scale, then additive masks: 0.0 (keep) / -inf (masked) == masked_fill.
    scores = scores * scale + mask_ref[...] + kpm_ref[...]

    # Numerically-stable softmax over the key axis (f32, exact).
    # NOTE: a fully-masked row yields NaN, same as PyTorch masked_fill+softmax.
    row_max = jnp.max(scores, axis=-1, keepdims=True)
    exp = jnp.exp(scores - row_max)
    denom = jnp.sum(exp, axis=-1, keepdims=True)
    probs = exp / denom

    attn_ref[...] = probs.astype(attn_ref.dtype)
    # probs . V with MXU-native dtype inputs and f32 accumulation.
    out_ref[...] = jnp.dot(
        probs.astype(v.dtype), v,
        preferred_element_type=jnp.float32).astype(out_ref.dtype)


def scaled_dot_product_attention(query, key, value, mask=None,
                                 key_padding_mask=None):
    """JAX/Pallas equivalent of ScaledDotProductAttention.forward (eval mode).

    query: (B, H, Sq, D), key/value: (B, H, Sk, D)
    mask: optional (Sq, Sk) bool or float (float -> masked where < 0.5)
    key_padding_mask: optional (B, Sk) bool (True = padded/masked)
    Returns (output (B,H,Sq,D), attention_weights (B,H,Sq,Sk)),
    both in query.dtype.
    """
    B, H, Sq, D = query.shape
    Sk = key.shape[2]
    scale = 1.0 / math.sqrt(D)

    # ---- tiny additive masks (built once; NOT (B,H,Sq,Sk)) ----
    if mask is not None:
        mbool = mask if mask.dtype == jnp.bool_ else (mask < 0.5)
        mask_add = jnp.where(mbool, -jnp.inf, 0.0).astype(jnp.float32)  # (Sq,Sk)
    else:
        mask_add = jnp.zeros((Sq, Sk), jnp.float32)
    if key_padding_mask is not None:
        kpm_add = jnp.where(key_padding_mask, -jnp.inf, 0.0).astype(jnp.float32)
    else:
        kpm_add = jnp.zeros((B, Sk), jnp.float32)
    kpm_add = kpm_add[:, None, :]                                       # (B,1,Sk)

    # Tile the query axis; 128 keeps the MXU M-dim full and bounds VMEM.
    TQ = 128 if Sq % 128 == 0 else Sq
    nq = Sq // TQ

    out, attn = pl.pallas_call(
        partial(_attn_kernel, scale=scale),
        out_shape=(
            jax.ShapeDtypeStruct((B, H, Sq, D), query.dtype),
            jax.ShapeDtypeStruct((B, H, Sq, Sk), query.dtype),
        ),
        grid=(nq, B, H),   # q-tile outermost: mask tile stays resident over B*H
        in_specs=[
            pl.BlockSpec((None, None, TQ, D), lambda qi, b, h: (b, h, qi, 0)),
            pl.BlockSpec((None, None, Sk, D), lambda qi, b, h: (b, h, 0, 0)),
            pl.BlockSpec((None, None, Sk, D), lambda qi, b, h: (b, h, 0, 0)),
            pl.BlockSpec((TQ, Sk), lambda qi, b, h: (qi, 0)),
            pl.BlockSpec((None, 1, Sk), lambda qi, b, h: (b, 0, 0)),
        ],
        out_specs=(
            pl.BlockSpec((None, None, TQ, D), lambda qi, b, h: (b, h, qi, 0)),
            pl.BlockSpec((None, None, TQ, Sk), lambda qi, b, h: (b, h, qi, 0)),
        ),
        compiler_params=pltpu.CompilerParams(
            dimension_semantics=("parallel", "parallel", "parallel"),
            vmem_limit_bytes=32 * 1024 * 1024,
        ),
    )(query, key, value, mask_add, kpm_add)

    return out, attn


def _reference(query, key, value, mask=None, key_padding_mask=None):
    """Pure-JAX reference mirroring the PyTorch forward (eval mode)."""
    d_k = query.shape[-1]
    scores = jnp.einsum("bhqd,bhkd->bhqk", query, key,
                        precision="highest") / math.sqrt(d_k)
    if key_padding_mask is not None:
        scores = jnp.where(key_padding_mask[:, None, None, :], -jnp.inf, scores)
    if mask is not None:
        m = mask if mask.dtype == jnp.bool_ else (mask < 0.5)
        scores = jnp.where(m[None, None, :, :], -jnp.inf, scores)
    attn = jax.nn.softmax(scores, axis=-1)
    out = jnp.einsum("bhqk,bhkd->bhqd", attn, value, precision="highest")
    return out, attn


if __name__ == "__main__":
    B, H, Sq, Sk, D = 2, 4, 8, 8, 32
    key0 = jax.random.PRNGKey(0)
    kq, kk, kv = jax.random.split(key0, 3)

    q = jax.random.normal(kq, (B, H, Sq, D), dtype=jnp.float32)
    k = jax.random.normal(kk, (B, H, Sk, D), dtype=jnp.float32)
    v = jax.random.normal(kv, (B, H, Sk, D), dtype=jnp.float32)

    # causal attention mask (float style -> converted via < 0.5 like PyTorch)
    causal = jnp.tril(jnp.ones((Sq, Sk), dtype=jnp.float32))
    # key padding mask: last key of batch 1 is padded
    kpm = jnp.zeros((B, Sk), dtype=jnp.bool_).at[1, -1].set(True)

    out, attn = scaled_dot_product_attention(q, k, v, mask=causal,
                                             key_padding_mask=kpm)
    jax.block_until_ready((out, attn))

    out_ref, attn_ref = _reference(q, k, v, mask=causal, key_padding_mask=kpm)
    assert out.shape == (B, H, Sq, D) and attn.shape == (B, H, Sq, Sk)
    # tolerance allows for TPU matmul pass decomposition differences
    assert jnp.allclose(out, out_ref, atol=1e-2, rtol=1e-2), "output mismatch"
    assert jnp.allclose(attn, attn_ref, atol=1e-2, rtol=1e-2), "attn mismatch"

    # bf16 path: native-dtype matmuls with f32 accumulation inside the kernel.
    qb, kb, vb = (x.astype(jnp.bfloat16) for x in (q, k, v))
    out_b, _ = scaled_dot_product_attention(qb, kb, vb, mask=causal,
                                            key_padding_mask=kpm)
    jax.block_until_ready(out_b)
    out_bref, _ = _reference(qb.astype(jnp.float32), kb.astype(jnp.float32),
                             vb.astype(jnp.float32), mask=causal,
                             key_padding_mask=kpm)
    assert jnp.allclose(out_b.astype(jnp.float32), out_bref,
                        atol=5e-2, rtol=5e-2), "bf16 output mismatch"

    print("KERNEL_OK")
</pallas_src>

<mosaic_0001>
module attributes {stable_mosaic.version = 11 : i64} {
  func.func @_attn_kernel(%arg0: i32, %arg1: i32, %arg2: i32, %arg3: memref<1x1x8x32xf32, #tpu.memory_space<vmem>>, %arg4: memref<1x1x8x32xf32, #tpu.memory_space<vmem>>, %arg5: memref<1x1x8x32xf32, #tpu.memory_space<vmem>>, %arg6: memref<8x8xf32, #tpu.memory_space<vmem>>, %arg7: memref<1x1x8xf32, #tpu.memory_space<vmem>>, %arg8: memref<1x1x8x32xf32, #tpu.memory_space<vmem>>, %arg9: memref<1x1x8x8xf32, #tpu.memory_space<vmem>>) attributes {dimension_semantics = [#tpu.dimension_semantics<parallel>, #tpu.dimension_semantics<parallel>, #tpu.dimension_semantics<parallel>], iteration_bounds = array<i64: 1, 2, 4>, scalar_prefetch = 0 : i64, scratch_operands = 0 : i64, tpu.core_type = #tpu.core_type<tc>, window_params = [{transform_indices = @transform_0, window_bounds = array<i64: 1, 1, 8, 32>}, {transform_indices = @transform_1, window_bounds = array<i64: 1, 1, 8, 32>}, {transform_indices = @transform_2, window_bounds = array<i64: 1, 1, 8, 32>}, {transform_indices = @transform_3, window_bounds = array<i64: 8, 8>}, {transform_indices = @transform_4, window_bounds = array<i64: 1, 1, 8>}, {transform_indices = @transform_5, window_bounds = array<i64: 1, 1, 8, 32>}, {transform_indices = @transform_6, window_bounds = array<i64: 1, 1, 8, 8>}]} {
    %c0 = arith.constant 0 : index
    %c0_0 = arith.constant 0 : index
    %c0_1 = arith.constant 0 : index
    %c0_2 = arith.constant 0 : index
    %0 = vector.load %arg3[%c0, %c0_0, %c0_1, %c0_2] : memref<1x1x8x32xf32, #tpu.memory_space<vmem>>, vector<1x1x8x32xf32>
    %1 = vector.shape_cast %0 : vector<1x1x8x32xf32> to vector<8x32xf32>
    %c0_3 = arith.constant 0 : index
    %c0_4 = arith.constant 0 : index
    %c0_5 = arith.constant 0 : index
    %c0_6 = arith.constant 0 : index
    %2 = vector.load %arg4[%c0_3, %c0_4, %c0_5, %c0_6] : memref<1x1x8x32xf32, #tpu.memory_space<vmem>>, vector<1x1x8x32xf32>
    %3 = vector.shape_cast %2 : vector<1x1x8x32xf32> to vector<8x32xf32>
    %c0_7 = arith.constant 0 : index
    %c0_8 = arith.constant 0 : index
    %c0_9 = arith.constant 0 : index
    %c0_10 = arith.constant 0 : index
    %4 = vector.load %arg5[%c0_7, %c0_8, %c0_9, %c0_10] : memref<1x1x8x32xf32, #tpu.memory_space<vmem>>, vector<1x1x8x32xf32>
    %5 = vector.shape_cast %4 : vector<1x1x8x32xf32> to vector<8x32xf32>
    %cst = arith.constant dense<0.000000e+00> : vector<8x8xf32>
    %6 = tpu.matmul %1, %3, %cst {dimension_numbers = #tpu.dot_dimension_numbers<[1], [1], [0], [0], [0, 0, 1, 0], [], []>} : vector<8x32xf32>, vector<8x32xf32>, vector<8x8xf32> -> vector<8x8xf32>
    %cst_11 = arith.constant 0.176776692 : f32
    %7 = vector.broadcast %cst_11 : f32 to vector<8x8xf32>
    %8 = arith.mulf %6, %7 : vector<8x8xf32>
    %c0_12 = arith.constant 0 : index
    %c0_13 = arith.constant 0 : index
    %9 = vector.load %arg6[%c0_12, %c0_13] : memref<8x8xf32, #tpu.memory_space<vmem>>, vector<8x8xf32>
    %10 = arith.addf %8, %9 : vector<8x8xf32>
    %c0_14 = arith.constant 0 : index
    %c0_15 = arith.constant 0 : index
    %c0_16 = arith.constant 0 : index
    %11 = vector.load %arg7[%c0_14, %c0_15, %c0_16] : memref<1x1x8xf32, #tpu.memory_space<vmem>>, vector<1x1x8xf32>
    %12 = vector.shape_cast %11 : vector<1x1x8xf32> to vector<1x8xf32>
    %13 = vector.broadcast %12 : vector<1x8xf32> to vector<8x8xf32>
    %14 = arith.addf %10, %13 : vector<8x8xf32>
    %cst_17 = arith.constant dense<0xFF800000> : vector<8xf32>
    %15 = vector.multi_reduction <maximumf>, %14, %cst_17 [1] : vector<8x8xf32> to vector<8xf32>
    %16 = vector.shape_cast %15 : vector<8xf32> to vector<8x1xf32>
    %17 = vector.broadcast %16 : vector<8x1xf32> to vector<8x8xf32>
    %18 = arith.subf %14, %17 : vector<8x8xf32>
    %19 = math.exp %18 : vector<8x8xf32>
    %cst_18 = arith.constant dense<0.000000e+00> : vector<8xf32>
    %20 = vector.multi_reduction <add>, %19, %cst_18 [1] : vector<8x8xf32> to vector<8xf32>
    %21 = vector.shape_cast %20 : vector<8xf32> to vector<8x1xf32>
    %22 = vector.broadcast %21 : vector<8x1xf32> to vector<8x8xf32>
    %23 = arith.divf %19, %22 : vector<8x8xf32>
    %c0_19 = arith.constant 0 : index
    %c0_20 = arith.constant 0 : index
    %c0_21 = arith.constant 0 : index
    %c0_22 = arith.constant 0 : index
    %24 = vector.load %arg9[%c0_19, %c0_20, %c0_21, %c0_22] : memref<1x1x8x8xf32, #tpu.memory_space<vmem>>, vector<1x1x8x8xf32>
    %25 = vector.shape_cast %24 : vector<1x1x8x8xf32> to vector<8x8xf32>
    %26 = vector.shape_cast %23 : vector<8x8xf32> to vector<1x1x8x8xf32>
    tpu.vector_store %arg9[%c0_19, %c0_20, %c0_21, %c0_22], %26 {strides = array<i32>} : memref<1x1x8x8xf32, #tpu.memory_space<vmem>>, vector<1x1x8x8xf32>,
    %cst_23 = arith.constant dense<0.000000e+00> : vector<8x32xf32>
    %27 = tpu.matmul %23, %5, %cst_23 {dimension_numbers = #tpu.dot_dimension_numbers<[1], [0], [0], [1], [0, 0, 1, 1], [], []>} : vector<8x8xf32>, vector<8x32xf32>, vector<8x32xf32> -> vector<8x32xf32>
    %c0_24 = arith.constant 0 : index
    %c0_25 = arith.constant 0 : index
    %c0_26 = arith.constant 0 : index
    %c0_27 = arith.constant 0 : index
    %28 = vector.load %arg8[%c0_24, %c0_25, %c0_26, %c0_27] : memref<1x1x8x32xf32, #tpu.memory_space<vmem>>, vector<1x1x8x32xf32>
    %29 = vector.shape_cast %28 : vector<1x1x8x32xf32> to vector<8x32xf32>
    %30 = vector.shape_cast %27 : vector<8x32xf32> to vector<1x1x8x32xf32>
    tpu.vector_store %arg8[%c0_24, %c0_25, %c0_26, %c0_27], %30 {strides = array<i32>} : memref<1x1x8x32xf32, #tpu.memory_space<vmem>>, vector<1x1x8x32xf32>,
    return
  }
  func.func @transform_0(%arg0: i32, %arg1: i32, %arg2: i32) -> (i32, i32, i32, i32) {
    %c0_i32 = arith.constant 0 : i32
    %c0_i32_0 = arith.constant 0 : i32
    return %arg1, %arg2, %arg0, %c0_i32 : i32, i32, i32, i32
  }
  func.func @transform_1(%arg0: i32, %arg1: i32, %arg2: i32) -> (i32, i32, i32, i32) {
    %c0_i32 = arith.constant 0 : i32
    %c0_i32_0 = arith.constant 0 : i32
    %c0_i32_1 = arith.constant 0 : i32
    return %arg1, %arg2, %c0_i32, %c0_i32_0 : i32, i32, i32, i32
  }
  func.func @transform_2(%arg0: i32, %arg1: i32, %arg2: i32) -> (i32, i32, i32, i32) {
    %c0_i32 = arith.constant 0 : i32
    %c0_i32_0 = arith.constant 0 : i32
    %c0_i32_1 = arith.constant 0 : i32
    return %arg1, %arg2, %c0_i32, %c0_i32_0 : i32, i32, i32, i32
  }
  func.func @transform_3(%arg0: i32, %arg1: i32, %arg2: i32) -> (i32, i32) {
    %c0_i32 = arith.constant 0 : i32
    %c0_i32_0 = arith.constant 0 : i32
    return %arg0, %c0_i32 : i32, i32
  }
  func.func @transform_4(%arg0: i32, %arg1: i32, %arg2: i32) -> (i32, i32, i32) {
    %c0_i32 = arith.constant 0 : i32
    %c0_i32_0 = arith.constant 0 : i32
    %c0_i32_1 = arith.constant 0 : i32
    return %arg1, %c0_i32, %c0_i32_0 : i32, i32, i32
  }
  func.func @transform_5(%arg0: i32, %arg1: i32, %arg2: i32) -> (i32, i32, i32, i32) {
    %c0_i32 = arith.constant 0 : i32
    %c0_i32_0 = arith.constant 0 : i32
    return %arg1, %arg2, %arg0, %c0_i32 : i32, i32, i32, i32
  }
  func.func @transform_6(%arg0: i32, %arg1: i32, %arg2: i32) -> (i32, i32, i32, i32) {
    %c0_i32 = arith.constant 0 : i32
    %c0_i32_0 = arith.constant 0 : i32
    return %arg1, %arg2, %arg0, %c0_i32 : i32, i32, i32, i32
  }
}

</mosaic_0001>

<bundles_post_ra>
// kernel: tpu_custom_call.1
= control target key start
LH: loop header
LB: loop body
LE: loop exit
PB: predicated region body
PF: predicated region fallthrough
CT: control target
= control target key end

     0   :  { %s1569_s0 = inlined_call_operand.hbm [shape: f32[2,4,8,32], index: 0, kind: input, shape index: {}]   ;;  %s1570_s1 = inlined_call_operand.hbm [shape: f32[2,4,8,32], index: 1, kind: input, shape index: {}]   ;;  %s1571_s2 = inlined_call_operand.hbm [shape: f32[2,4,8,32], index: 2, kind: input, shape index: {}]   ;;  %s1572_s3 = inlined_call_operand.hbm [shape: f32[8,8], index: 3, kind: input, shape index: {}]   ;;  %s1573_s4 = inlined_call_operand.vmem [shape: f32[2,1,8], index: 4, kind: input, shape index: {}]   ;;  %s1574_s5 = inlined_call_operand.hbm [shape: f32[2,4,8,32], index: 5, kind: output, shape index: {0}]   ;;  %s1575_s6 = inlined_call_operand.hbm [shape: f32[2,4,8,8], index: 6, kind: output, shape index: {1}]  }
   0x1   :  { %1588 = sst [smem:[#allocation25_spill]] %s1570_s1 }
   0x2   :  { %12 = vsyncpa [#allocation3], 0 }
   0x3   :  { %14 = vsyncpa [#allocation3 + $0x1], 0 }
   0x4   :  { %15 = vsyncpa [#allocation6], 0 }
   0x5   :  { %17 = vsyncpa [#allocation6 + $0x1], 0 }
   0x6   :  { %18 = vsyncpa [#allocation9], 0 }
   0x7   :  { %19 = vsyncpa [#allocation4], 0 }
   0x8   :  { %21 = vsyncpa [#allocation4 + $0x1], 0 }
   0x9   :  { %22 = vsyncpa [#allocation12], 0 }
   0xa   :  { %24 = vsyncpa [#allocation12 + $0x1], 0  ;;  %s1280_s21 = smov 0   ;;  %s1282_s22 = smov 0  }
   0xb   :  { %s1284_s23 = smov 0   ;;  %s1286_s24 = smov 0  }
   0xc   :  { %s1288_s25 = smov 0   ;;  %s1290_s26 = smov 0  }
   0xd   :  { %s1292_s27 = smov 0   ;;  %s1294_s28 = smov 0  }
   0xe LB: > { %1589 = sst [smem:[#allocation18_spill]] %s1207_s21  ;;  %s42_s29 = sadd.s32 1, %s1227_s26  ;;  %s1235_s28 = sphi %s1294_s28, %s30_s28   ;;  %s1231_s27 = sphi %s1292_s27, %s1617_s27   ;;  %s1227_s26 = sphi %s1290_s26, %s1616_s26   ;;  %s1223_s25 = sphi %s1288_s25, %s1615_s25   ;;  %s1219_s24 = sphi %s1286_s24, %s1614_s24   ;;  %s1215_s23 = sphi %s1284_s23, %s1620_s23   ;;  %s1211_s22 = sphi %s1282_s22, %s1619_s22   ;;  %s1207_s21 = sphi %s1280_s21, %s1618_s21  }
   0xf   : > { %1590 = sst [smem:[#allocation19_spill]] %s1227_s26  ;;  %s45_s30 = sadd.s32 1, %s1231_s27 }
  0x10   : > { %1591 = sst [smem:[#allocation20_spill]] %s1231_s27  ;;  %p43_p0 = scmp.ge.s32.totalorder %s42_s29, 4 }
  0x11   : > { %s60_s7 = sadd.s32 1, %s1215_s23  ;;  %p67_p1 = scmp.ne.s32.totalorder %s1215_s23, %s1211_s22 }
  0x12   : > { %p68_p2 = scmp.eq.s32.totalorder %s1235_s28, 0  ;;  %s1622_s29 = smov (%p43_p0, %s42_s29), 0 }
  0x13   : > { %1592 = sst [smem:[#allocation21_spill]] %s1622_s29  ;;  %s1624_s30 = smov (!%p43_p0, %s45_s30), %s1231_s27 }
  0x14   : > { %s54_s8 = ssub.s32 %s1227_s26, %s1622_s29  ;;  %p69_p3 = por %p68_p2, %p67_p1 }
  0x15   : > { %p47_p4 = scmp.ge.s32.totalorder %s1624_s30, 2  ;;  %p917_p5 = scmp.lt.s32.totalorder %s1235_s28, 8 }
  0x16   : > { %s1576_s9 = sand.u32 1, %s1215_s23   ;;  %s840_s11 = sshll.u32 %s1231_s27, 2 }
  0x17   : > { %s1626_s30 = smov (%p47_p4, %s1624_s30), 0  ;;  %s1340_s10 = sshll.u32 %s1576_s9, 3 }
  0x18   : > { %1593 = sst [smem:[#allocation22_spill]] %s1626_s30  ;;  %s53_s12 = ssub.s32 %s1231_s27, %s1626_s30 }
  0x19   : > { %s288_s13 = sadd.s32 %s1227_s26, %s840_s11  ;;  %s55_s14 = sor.u32 %s54_s8, %s53_s12 }
  0x1a   : > { %s1346_s15 = sshll.u32 %s288_s13, 7  ;;  %p58_p6 = scmp.eq.s32.totalorder %s55_s14, 0 }
  0x1b   : > { %p1348_p7 = pnand %p917_p5, %p69_p3  ;;  %s299_s17 = sand.u32 1, %s1235_s28  }
  0x1c   : > { %s1354_s18 = scalar_select %p58_p6, %s1215_s23, %s60_s7  }
  0x1d   : > { %s1596_s1 = sld [smem:[#allocation25_spill]]  ;;  %s303_s30 = scalar_lea.vmem [#allocation5], %s1340_s10 }
  0x1e   : > { %1595 = sst [smem:[#allocation23_spill]] %s1354_s18  ;;  %s312_s11 = sshll.u32 %s303_s30, 4  ;;  %s313_s11 = int_to_ptr.vmem [resolvable:$true] %s312_s11 }
  0x1f   : > { %s1361_s8 = scalar_lea.sflag [#allocation6], %s299_s17  ;;  %p1584_p8 = pneg %p1348_p7 }
  0x20   : > { %s1004_s12 = scalar_lea.vmem %s313_s11, 128  ;;  %s1237_s13 = smov [#allocation5]  }
  0x21   : > { %p1005_p9 = scmp.ne.s32.totalorder %s313_s11, %s1004_s12  ;;  %s1009_s7 = sshll.u32 %s1237_s13, 4  ;;  %s1010_s7 = int_to_ptr.vmem [resolvable:$false] %s1009_s7 }
  0x22   : > { %s1011_s14 = scalar_lea.vmem %s1010_s7, 256  ;;  %p1012_p12 = scmp.lt.s32.totalorder %s313_s11, %s1010_s7 }
  0x23   : > { %s310_s9 = scalar_lea.hbm %s1596_s1, %s1346_s15  ;;  %p1007_p10 = pnand %p1005_p9, %p1584_p8 }
  0x24   : > { %p1013_p13 = scmp.lt.s32.totalorder %s1011_s14, %s1004_s12 }
  0x25   : > { %p1008_p11 = pneg %p1007_p10 }
  0x26   : > { %p1014_p0 = por %p1013_p13, %p1012_p12 }
  0x28   : > { %p1015_p2 = pnand %p1014_p0, %p1008_p11 }
  0x2a   : > { %1018 = shalt.err (!%p1015_p2)
}
  0x2b   : > { %905 = dma.hbm_to_vmem [thread:$0]  (!%p1348_p7), %s310_s9, 128, %s313_s11, %s1361_s8  }
  0x2c   : > { %s1372_s30 = sadd.s32 4294967295, %s1235_s28   ;;  %s835_s17 = sadd.s32 4294967294, %s1235_s28  }
  0x2d   : > { %p73_p3 = scmp.ne.s32.totalorder %s1211_s22, %s1207_s21  ;;  %p1583_p4 = scmp.eq.s32.totalorder %s1372_s30, 0 }
  0x2e   : > { %p209_p5 = scmp.eq.s32.totalorder %s1372_s30, 7  ;;  %p215_p6 = scmp.eq.s32.totalorder %s835_s17, 7 }
  0x2f   : > { %p836_p9 = scmp.ge.s32.totalorder %s1235_s28, 1  ;;  %p1382_p10 = por %p1583_p4, %p73_p3 }
  0x30   : > { %p1389_p11 = por %p209_p5, %p67_p1  ;;  %p1393_p12 = por %p215_p6, %p73_p3 }
  0x31   : > { %s1597_s19 = scalar_select %p1382_p10, 1, 0 }
  0x32   : > { %s1598_s9 = scalar_select %p1389_p11, 1, 0 }
  0x33   : > { %s1599_s20 = scalar_select %p1393_p12, 1, 0 }
  0x34   : > { %p252_p13 = scmp.lt.s32.totalorder %s1235_s28, 9  ;;  %s1238_s12 = smov [#allocation8]  }
  0x35   : > { %1600 = sst [smem:[#allocation24_spill]] %s1599_s20  ;;  %s267_s13 = sshll.u32 %s1238_s12, 4  ;;  %s1402_s13 = int_to_ptr.vmem [resolvable:$true] %s267_s13 }
  0x36   : > { %p1398_p0 = pnand %p836_p9, %p252_p13  ;;  %s290_s17 = scalar_lea.hbm %s1569_s0, %s1346_s15 }
  0x37   : > { %s282_s1 = scalar_lea.vmem [#allocation2], %s1340_s10  ;;  %s1603_s26 = sand.u32 1, %s1215_s23  }
  0x38   : > { %s1601_s11 = scalar_select %p1398_p0, 1, 0 }
  0x39   : > { %p895_p1 = pneg %p1398_p0  ;;  %s292_s29 = sshll.u32 %s282_s1, 4  ;;  %s293_s29 = int_to_ptr.vmem [resolvable:$true] %s292_s29 }
  0x3a   : > { %s279_s18 = scalar_lea.sflag [#allocation3], %s1603_s26  ;;  %s1032_s20 = scalar_lea.vmem %s293_s29, 128 }
  0x3b   : > { %p1413_p2 = pnand %p895_p1, %p1583_p4  ;;  %p1033_p3 = scmp.ne.s32.totalorder %s293_s29, %s1032_s20 }
  0x3c   : > { %s1239_s12 = smov [#allocation2]  }
  0x3d   : > { %p1035_p5 = pnand %p1033_p3, %p1584_p8  ;;  %s1037_s21 = sshll.u32 %s1239_s12, 4  ;;  %s1038_s21 = int_to_ptr.vmem [resolvable:$false] %s1037_s21 }
  0x3e   : > { %s1039_s7 = scalar_lea.vmem %s1038_s21, 256  ;;  %p1040_p9 = scmp.lt.s32.totalorder %s293_s29, %s1038_s21 }
  0x3f   : > { %p1036_p6 = pneg %p1035_p5  ;;  %p1041_p13 = scmp.lt.s32.totalorder %s1039_s7, %s1032_s20 }
  0x41   : > { %p1042_p12 = por %p1041_p13, %p1040_p9 }
  0x43   : > { %p1043_p1 = pnand %p1042_p12, %p1036_p6 }
  0x45   : > { %1046 = shalt.err (!%p1043_p1)
}
  0x46   : > { %902 = dma.hbm_to_vmem [thread:$0]  (!%p1348_p7), %s290_s17, 128, %s293_s29, %s279_s18  }
  0x47   : > { %p1049_p4 = pneg %p1413_p2  ;;  %s1058_s1 = scalar_lea.vmem %s1402_s13, 128 }
  0x48   : > { %p1059_p3 = scmp.ne.s32.totalorder %s1402_s13, %s1058_s1  ;;  %p1066_p11 = scmp.lt.s32.totalorder %s1402_s13, %s1402_s13 }
  0x49   : > { %p1067_p10 = scmp.lt.s32.totalorder %s1058_s1, %s1058_s1 }
  0x4a   : > { %p1061_p5 = pnand %p1059_p3, %p1049_p4 }
  0x4b   : > { %p1068_p0 = por %p1067_p10, %p1066_p11 }
  0x4c   : > { %p1062_p8 = pneg %p1061_p5 }
  0x4e   : > { %p1069_p9 = pnand %p1068_p0, %p1062_p8 }
  0x50   : > { %1072 = shalt.err (!%p1069_p9)
}
  0x51   : > { %898 = dma.hbm_to_vmem [thread:$0]  (!%p1413_p2), %s1572_s3, 128, %s1402_s13, [#allocation9]  }
  0x52   : > { %s330_s20 = scalar_lea.hbm %s1571_s2, %s1346_s15  ;;  %s323_s14 = scalar_lea.vmem [#allocation7], %s1340_s10 }
  0x53   : > { %s332_s17 = sshll.u32 %s323_s14, 4  ;;  %p1604_p4 = pneg %p1348_p7  ;;  %s333_s17 = int_to_ptr.vmem [resolvable:$true] %s332_s17 }
  0x54   : > { %s1086_s12 = scalar_lea.vmem %s333_s17, 128  ;;  %s1240_s27 = smov [#allocation7]  }
  0x55   : > { %p1087_p8 = scmp.ne.s32.totalorder %s333_s17, %s1086_s12  ;;  %s1091_s7 = sshll.u32 %s1240_s27, 4  ;;  %s1092_s7 = int_to_ptr.vmem [resolvable:$false] %s1091_s7 }
  0x56   : > { %s1093_s1 = scalar_lea.vmem %s1092_s7, 256  ;;  %p1094_p12 = scmp.lt.s32.totalorder %s333_s17, %s1092_s7 }
  0x57   : > { %p1089_p10 = pnand %p1087_p8, %p1604_p4  ;;  %p1095_p0 = scmp.lt.s32.totalorder %s1093_s1, %s1086_s12 }
  0x59   : > { %p1090_p11 = pneg %p1089_p10  ;;  %p1096_p2 = por %p1095_p0, %p1094_p12 }
  0x5b   : > { %p1097_p6 = pnand %p1096_p2, %p1090_p11 }
  0x5d   : > { %1100 = shalt.err (!%p1097_p6)
}
  0x5e   : > { %908 = dma.hbm_to_vmem [thread:$0]  (!%p1348_p7), %s330_s20, 128, %s333_s17, %s1361_s8  }
  0x5f   : > { %p1605_p13 = scmp.ne.s32.totalorder %s1601_s11, 0 }
  0x60   : > { %s1450_s10 = sand.u32 (!%p1605_p13), 1, %s1211_s22   ;;  %p1606_p1 = scmp.ne.s32.totalorder (!%p1605_p13), %s1597_s19, 0 }
  0x61   : > { %347 = sbr.rel (%p1605_p13) target bundleno = 833 (0x341), region = 40  ;;  %s1453_s15 = sshll.u32 (!%p1605_p13), %s1450_s10, 3 }
  0x62   : > { %s350_s13 = scalar_lea.sflag (!%p1605_p13), [#allocation3], %s1450_s10  ;;  %s353_s21 = scalar_lea.vmem (!%p1605_p13), [#allocation2], %s1453_s15 }
  0x66   : > { %1186 = dma.done.wait (%p1606_p1), %s350_s13, 128  }
  0x67   : > { %1188 = vsyncadd (%p1606_p1), %s350_s13, 4294967168  ;;  %s358_s16 = sand.u32 1, %s1372_s30   ;;  %s362_s11 = scalar_lea.vmem [#allocation5], %s1453_s15 }
  0x68   : > { %s359_s8 = scalar_lea.sflag [#allocation6], %s358_s16 }
  0x69   : > { %1190 = dma.done.wait (%p1606_p1), %s359_s8, 256  }
  0x6a   : > { %1192 = vsyncadd (%p1606_p1), %s359_s8, 4294967040  ;;  %s371_s26 = scalar_lea.vmem [#allocation7], %s1453_s15  ;;  %p1607_p7 = scmp.eq.s32.totalorder %s1372_s30, 0 }
  0x6c   : > { %1194 = dma.done.wait (%p1607_p7), [#allocation9], 128   ;;  %p1608_p3 = pmov %p1607_p7 }
  0x6d   : > { %v1241_v0 = vmov 0.0   ;;  %vm1242_vm0 = vmmov 0   ;;  %vm428_vm1 = vcmask 261120   ;;  %v426_v1 = vld [vmem:[%s362_s11] sm:$0xff]  ;;  %v425_v2 = vld [vmem:[%s353_s21] sm:$0xff]  ;;  %p422_p5 = scmp.lt.s32.totalorder %s1223_s25, 1 }
  0x6e   : > { %1196 = vsyncadd (%p1608_p3), [#allocation9], 4294967168  ;;  %871 = vmatprep.subr.mxu0 %v1241_v0  ;;  %873 = vmatprep.mubr.msk.f32.mxu0 %vm1242_vm0, %v1241_v0  ;;  %v506_v4 = vld [vmem:[#allocation8] sm:$0xff]  ;;  %vm516_vm2 = vcmask 64512   ;;  %v427_v16 = vld [vmem:[%s371_s26] sm:$0xff]  ;;  %s421_s20 = scalar_lea.vmem [#allocation11], %s1453_s15 }
  0x6f   : > { %876 = vmatprep.subr.mxu1 %v1241_v0  ;;  %878 = vmatprep.mubr.msk.f32.mxu1 %vm1242_vm0, %v1241_v0  ;;  %s423_s19 = scalar_select %p422_p5, %s1223_s25, 1 }
  0x70   : > { %872 = vmatpush3.xpose.msk.msra.mxu0 %vm428_vm1, %v426_v1  ;;  %877 = vmatpush3.msra.mxu1 %v427_v16  ;;  %s861_s14 = sshll.u32 %s1223_s25, 2  ;;  %s641_s13 = sshll.u32 %s421_s20, 4  ;;  %s642_s13 = int_to_ptr.vmem [resolvable:$true] %s641_s13 }
  0x71   : > { %s424_s18 = scalar_lea.vmem %s1573_s4, %s423_s19  ;;  %s1488_s17 = sadd.s32 %s1219_s24, %s861_s14 }
  0x72   : > { %v857_v7 = vld [vmem:[%s424_s18] ss:$0 sm:$0xff]  ;;  %s862_s12 = sshll.u32 %s1488_s17, 7  ;;  %s609_s21 = scalar_lea.sflag [#allocation12], %s1450_s10 }
  0x73   : > { %874 = vmatmul.mubr.msk.f32.vlgmr.msra.gmra.mxu0 %vm428_vm1, %v425_v2  ;;  %s639_s1 = scalar_lea.hbm %s1575_s6, %s862_s12  ;;  %s1101_s16 = scalar_lea.vmem %s642_s13, 128 }
  0x74   : > { %p1102_p9 = scmp.ne.s32.totalorder %s642_s13, %s1101_s16  ;;  %p1609_p8 = scmp.ne.s32.totalorder %s1598_s9, 0 }
  0x75   : > { %s1243_s8 = smov [#allocation11]  }
  0x76   : > { %p1103_p4 = pnand %p1102_p9, %p1609_p8  ;;  %s1105_s25 = sshll.u32 %s1243_s8, 4  ;;  %s1106_s25 = int_to_ptr.vmem [resolvable:$false] %s1105_s25 }
  0x77   : > { %s1107_s24 = scalar_lea.vmem %s1106_s25, 256  ;;  %p1108_p11 = scmp.lt.s32.totalorder %s642_s13, %s1106_s25 }
  0x78   : > { %p1104_p10 = pneg %p1103_p4  ;;  %p1109_p12 = scmp.lt.s32.totalorder %s1107_s24, %s1101_s16 }
  0x7a   : > { %p1110_p0 = por %p1109_p12, %p1108_p11 }
  0x7c   : > { %p1111_p2 = pnand %p1110_p0, %p1104_p10 }
 0x133   : > { %v501_v3 = vpop.f32.mrf.mxu0 }
 0x134   : > { %v505_v5 = vmul.f32 0.17677669, %v501_v3 }
 0x135   : > { %v875_v6 = vpop.f32.mrf.mxu0 }
 0x136   : > { %v507_v8 = vadd.f32 %v506_v4, %v505_v5 }
 0x138   : > { %v515_v9 = vadd.f32 %v857_v7, %v507_v8 }
 0x13a   : > { %v517_v10 = vsel %vm516_vm2, %v515_v9, -inf }
 0x13b   : > { %518 = vmax.xlane.f32.xlu0 %v517_v10 }
 0x1c4   : > { %v519_v11 = vpop.xlane.xlu0 %518 }
 0x1c5   : > { %v520_v12 = vsub.f32 %v515_v9, %v519_v11 }
 0x1c7   : > { %v521_v13 = vmul.f32 1.442695, %v520_v12 }
 0x1c9   : > { %987 = vpow2.f32 %v521_v13 }
 0x1d6   : > { %v988_v14 = vpop.eup %987 }
 0x1d7   : > { %v523_v15 = vsel %vm516_vm2, %v988_v14, 0.0 }
 0x1d8   : > { %524 = vadd.xlane.f32.xlu0 %v523_v15 }
 0x261   : > { %v525_v17 = vpop.xlane.xlu0 %524 }
 0x262   : > { %989 = vrcp.f32 %v525_v17 }
 0x26f   : > { %v990_v18 = vpop.eup %989 }
 0x270   : > { %v527_v19 = vmul.f32 %v990_v18, %v988_v14 }
 0x272   : > { %879 = vmatmul.mubr.msk.f32.vlgmr.msra.gmra.mxu1 %vm516_vm2, %v527_v19  ;;  %528 = vst.msk [vmem:[%s421_s20] sm:$0xff] %vm516_vm2, %v527_v19 }
 0x273   : > { %1114 = shalt.err (!%p1111_p2)
}
 0x274   : > { %s1115_s11 = scalar_lea.hbm %s639_s1, 128  ;;  %s1119_s29 = scalar_lea.hbm %s1575_s6, 1024 }
 0x275   : > { %p1116_p6 = scmp.ne.s32.totalorder %s639_s1, %s1115_s11  ;;  %p1120_p7 = scmp.lt.s32.totalorder %s639_s1, %s1575_s6 }
 0x276   : > { %p1121_p3 = scmp.lt.s32.totalorder %s1119_s29, %s1115_s11 }
 0x277   : > { %p1117_p13 = pnand %p1116_p6, %p1609_p8 }
 0x278   : > { %p1122_p5 = por %p1121_p3, %p1120_p7 }
 0x279   : > { %p1118_p1 = pneg %p1117_p13 }
 0x27b   : > { %p1123_p9 = pnand %p1122_p5, %p1118_p1 }
 0x27d   : > { %1126 = shalt.err (!%p1123_p9)
}
 0x27e   : > { %892 = dma.vmem_to_hbm [thread:$0]  (%p1609_p8), %s642_s13, 128, %s639_s1, %s609_s21  }
 0x27f   : > { %s414_s20 = scalar_lea.vmem [#allocation10], %s1453_s15  ;;  %s1515_s16 = scalar_lea.hbm %s1574_s5, %s862_s12 }
 0x280   : > { %s625_s14 = sshll.u32 %s414_s20, 4  ;;  %s604_s8 = scalar_lea.sflag [#allocation4], %s1450_s10  ;;  %s1517_s14 = int_to_ptr.vmem [resolvable:$true] %s625_s14 }
 0x281   : > { %s1127_s25 = scalar_lea.vmem %s1517_s14, 128  ;;  %s1244_s15 = smov [#allocation10]  }
 0x282   : > { %p1128_p4 = scmp.ne.s32.totalorder %s1517_s14, %s1127_s25  ;;  %s1131_s17 = sshll.u32 %s1244_s15, 4  ;;  %s1132_s17 = int_to_ptr.vmem [resolvable:$false] %s1131_s17 }
 0x283   : > { %s1133_s12 = scalar_lea.vmem %s1132_s17, 256  ;;  %p1134_p12 = scmp.lt.s32.totalorder %s1517_s14, %s1132_s17 }
 0x284   : > { %p1129_p10 = pnand %p1128_p4, %p1609_p8  ;;  %p1135_p0 = scmp.lt.s32.totalorder %s1133_s12, %s1127_s25 }
 0x286   : > { %p1130_p11 = pneg %p1129_p10  ;;  %p1136_p2 = por %p1135_p0, %p1134_p12 }
 0x288   : > { %p1137_p6 = pnand %p1136_p2, %p1130_p11 }
 0x332   : > { %v598_v20 = vpop.f32.mrf.mxu1 }
 0x333   : > { %602 = vst.msk [vmem:[%s414_s20] sm:$0xff] %vm428_vm1, %v598_v20 }
 0x334   : > { %v880_v21 = vpop.f32.mrf.mxu1 }
 0x335   : > { %1140 = shalt.err (!%p1137_p6)
}
 0x336   : > { %s1141_s1 = scalar_lea.hbm %s1515_s16, 128  ;;  %s1145_s21 = scalar_lea.hbm %s1574_s5, 1024 }
 0x337   : > { %p1142_p13 = scmp.ne.s32.totalorder %s1515_s16, %s1141_s1  ;;  %p1146_p3 = scmp.lt.s32.totalorder %s1515_s16, %s1574_s5 }
 0x338   : > { %p1147_p5 = scmp.lt.s32.totalorder %s1145_s21, %s1141_s1 }
 0x339   : > { %p1143_p1 = pnand %p1142_p13, %p1609_p8 }
 0x33a   : > { %p1148_p9 = por %p1147_p5, %p1146_p3 }
 0x33b   : > { %p1144_p7 = pneg %p1143_p1 }
 0x33d   : > { %p1149_p4 = pnand %p1148_p9, %p1144_p7 }
 0x33f   : > { %1152 = shalt.err (!%p1149_p4)
}
 0x340   : > { %891 = dma.vmem_to_hbm [thread:$0]  (%p1609_p8), %s1517_s14, 128, %s1515_s16, %s604_s8  }
 0x341 PF: > { %s1610_s26 = sld [smem:[#allocation18_spill]]  ;;  %p919_p10 = scmp.ge.s32.totalorder %s1235_s28, 2 }
 0x342   : > { %s1611_s19 = sld [smem:[#allocation24_spill]] }
 0x347   : > { %s653_s29 = sand.u32 1, %s1610_s26  }
 0x348   : > { %p1612_p11 = scmp.ne.s32.totalorder %s1611_s19, 0  ;;  %s654_s30 = scalar_lea.sflag [#allocation4], %s653_s29 }
 0x34a   : > { %p910_p12 = pnand %p919_p10, %p1612_p11 }
 0x34c   : > { %p911_p0 = pneg %p910_p12 }
 0x34e   : > { %1198 = dma.done.wait (%p911_p0), %s654_s30, 128  }
 0x34f   : > { %1200 = vsyncadd (%p911_p0), %s654_s30, 4294967168  ;;  %s663_s18 = scalar_lea.sflag [#allocation12], %s653_s29 }
 0x350   : > { %1202 = dma.done.wait (%p911_p0), %s663_s18, 128  }
 0x351   : > { %1204 = vsyncadd (%p911_p0), %s663_s18, 4294967168  ;;  %s30_s28 = sadd.s32 1, %s1235_s28   ;;  %s1613_s9 = sld [smem:[#allocation23_spill]] }
 0x352   : > { %p27_p2 = scmp.ge.s32.totalorder %s30_s28, 10   ;;  %s1614_s24 = sld [smem:[#allocation19_spill]] }
 0x353   : > { %s1615_s25 = sld [smem:[#allocation20_spill]]  ;;  %s1618_s21 = smov %s1211_s22 }
 0x354   : > { %s1616_s26 = sld [smem:[#allocation21_spill]]  ;;  %s1619_s22 = smov %s1215_s23 }
 0x355   : > { %s1617_s27 = sld [smem:[#allocation22_spill]]  ;;  %29 = sbr.rel (!%p27_p2) target bundleno = 14 (0xe), region = 134 }
 0x357   : > { %s1620_s23 = smov %s1613_s9 }
 0x35a   :  { %668 = vsyncpa [#allocation3], 1 }
 0x35b   :  { %670 = vsyncpa [#allocation3 + $0x1], 1 }
 0x35c   :  { %671 = vsyncpa [#allocation6], 1 }
 0x35d   :  { %673 = vsyncpa [#allocation6 + $0x1], 1 }
 0x35e   :  { %674 = vsyncpa [#allocation9], 1 }
 0x35f   :  { %675 = vsyncpa [#allocation4], 1 }
 0x360   :  { %677 = vsyncpa [#allocation4 + $0x1], 1 }
 0x361   :  { %678 = vsyncpa [#allocation12], 1 }
 0x362   :  { %680 = vsyncpa [#allocation12 + $0x1], 1 }

</bundles_post_ra>
